<compile_context>
chip_gen: v7x
topology: tpu7x:2x2x1
jax: 0.10.0
libtpu: 0.0.40
codegen_flags: <defaults>
</compile_context>

<pallas_src>
import functools
import math

import jax
import jax.numpy as jnp
from jax import lax
from jax.experimental import pallas as pl
from jax.experimental.pallas import tpu as pltpu


# --------------------------- tile-size selection ----------------------------
def _mxu_score_block():
    """256x256 score tiles on v6e/v7x (2x256^2 MXU), 128 on v4/v5 (128-deep)."""
    try:
        kind = jax.devices()[0].device_kind.lower()
    except Exception:
        kind = ""
    return 128 if ("v5" in kind or "v4" in kind) else 256


def _pick_block(n, target):
    """Largest tile <= target that divides n (falls back to the full dim)."""
    for blk in (target, target // 2, 128, 64, 32, 16, 8):
        if blk <= n and n % blk == 0:
            return blk
    return n


# ------------------------ kernel 1: QKV projection ---------------------------
def qkv_proj_kernel(x_ref, w_ref, b_ref, q_ref, k_ref, v_ref, *, n_embd, scale):
    """Fused QKV projection over one row tile of the folded (B*T, D) activations."""
    d = n_embd
    qkv = jnp.dot(x_ref[...], w_ref[...],
                  preferred_element_type=jnp.float32) + b_ref[...]
    # Pre-scale q by 1/sqrt(head_dim) once here (M*D elements) instead of
    # scaling every (block_q, block_kv) score tile later.
    q_ref[...] = (qkv[:, 0 * d:1 * d] * scale).astype(q_ref.dtype)
    k_ref[...] = qkv[:, 1 * d:2 * d].astype(k_ref.dtype)
    v_ref[...] = qkv[:, 2 * d:3 * d].astype(v_ref.dtype)


# --------- kernel 2: flash attention + fused output projection ---------------
def flash_attn_kernel(q_ref, k_ref, v_ref, w_o_ref, b_o_ref, o_ref,
                      m_sc, l_sc, acc_sc, *, n_head, block_q, block_kv):
    """Per-(batch, q-block) causal flash attention, output projection folded in.

    grid = (batch, q_block, kv_block); the kv axis is last and "arbitrary".
    m_sc/l_sc/acc_sc carry the per-head online-softmax state across kv blocks.
    """
    qi = pl.program_id(1)
    ki = pl.program_id(2)
    d = q_ref.shape[-1]
    hd = d // n_head

    @pl.when(ki == 0)
    def _init():
        m_sc[...] = jnp.full(m_sc.shape, -jnp.inf, jnp.float32)
        l_sc[...] = jnp.zeros(l_sc.shape, jnp.float32)
        acc_sc[...] = jnp.zeros(acc_sc.shape, jnp.float32)

    def kv_step(masked):
        q = q_ref[0]                      # (block_q, D)  bf16, pre-scaled
        k = k_ref[0]                      # (block_kv, D) bf16
        v = v_ref[0]                      # (block_kv, D) bf16
        if masked:                        # mask built ONLY on diagonal blocks
            row = lax.broadcasted_iota(jnp.int32, (block_q, block_kv), 0)
            col = lax.broadcasted_iota(jnp.int32, (block_q, block_kv), 1)
            bias = jnp.where(row >= col, jnp.float32(0.0), jnp.float32(-1e30))
        for h in range(n_head):           # static head loop; slices stay in-register
            qh = q[:, h * hd:(h + 1) * hd]
            kh = k[:, h * hd:(h + 1) * hd]
            vh = v[:, h * hd:(h + 1) * hd]
            s = lax.dot_general(qh, kh, (((1,), (1,)), ((), ())),
                                preferred_element_type=jnp.float32)
            if masked:
                s = s + bias
            m_prev = m_sc[h]                                        # (block_q, 1)
            m_new = jnp.maximum(m_prev, jnp.max(s, axis=-1, keepdims=True))
            alpha = jnp.exp(m_prev - m_new)
            p = jnp.exp(s - m_new)
            l_sc[h] = alpha * l_sc[h] + jnp.sum(p, axis=-1, keepdims=True)
            acc_sc[h] = alpha * acc_sc[h] + jnp.dot(
                p.astype(jnp.bfloat16), vh, preferred_element_type=jnp.float32)
            m_sc[h] = m_new

    # Causal block pruning: kv blocks strictly above the diagonal (ki > qi) run
    # no compute at all (their DMA is also elided by the clamped kv index_map).
    @pl.when(ki == qi)
    def _diag_block():
        kv_step(masked=True)

    @pl.when(ki < qi)
    def _below_diag_block():
        kv_step(masked=False)

    # Finalize on the last kv grid step: normalize and fold the output
    # projection into the head loop -> one lane-dense (block_q, D) store.
    @pl.when(ki == pl.num_programs(2) - 1)
    def _finalize():
        w_o = w_o_ref[...]                # (D, D) bf16, resident
        y = jnp.zeros((block_q, d), jnp.float32)
        for h in range(n_head):
            inv_l = pl.reciprocal(l_sc[h], approx=True)             # EUP slot
            oh = (acc_sc[h] * inv_l).astype(jnp.bfloat16)           # (block_q, hd)
            y = y + jnp.dot(oh, w_o[h * hd:(h + 1) * hd, :],
                            preferred_element_type=jnp.float32)
        o_ref[0] = (y + b_o_ref[...]).astype(o_ref.dtype)
    # attn_dropout / resid_dropout have p=0.0 -> identity (omitted).


# --------------------------------- wrapper ----------------------------------
def causal_self_attention(x, params, n_head, *, block_t=None, block_m=None):
    b, t, d = x.shape
    assert d % n_head == 0
    hd = d // n_head
    m = b * t

    # bf16 activations & weights (half the DMA / VMEM); biases stay f32.
    x16 = x.reshape(m, d).astype(jnp.bfloat16)
    w_qkv = params["w_qkv"].astype(jnp.bfloat16)
    w_o = params["w_o"].astype(jnp.bfloat16)
    b_qkv = params["b_qkv"].astype(jnp.float32)
    b_o = params["b_o"].astype(jnp.float32)

    # ---- kernel 1: QKV projection over folded (B*T) rows, row-tiled grid ----
    if block_m is None:
        block_m = _pick_block(m, 512)
    q, k, v = pl.pallas_call(
        functools.partial(qkv_proj_kernel, n_embd=d, scale=1.0 / math.sqrt(hd)),
        grid=(m // block_m,),
        in_specs=[
            pl.BlockSpec((block_m, d), lambda i: (i, 0)),     # x rows (pipelined)
            pl.BlockSpec((d, 3 * d), lambda i: (0, 0)),       # W_qkv (resident)
            pl.BlockSpec((1, 3 * d), lambda i: (0, 0)),       # b_qkv
        ],
        out_specs=(
            pl.BlockSpec((block_m, d), lambda i: (i, 0)),
            pl.BlockSpec((block_m, d), lambda i: (i, 0)),
            pl.BlockSpec((block_m, d), lambda i: (i, 0)),
        ),
        out_shape=(
            jax.ShapeDtypeStruct((m, d), jnp.bfloat16),
            jax.ShapeDtypeStruct((m, d), jnp.bfloat16),
            jax.ShapeDtypeStruct((m, d), jnp.bfloat16),
        ),
        compiler_params=pltpu.CompilerParams(
            dimension_semantics=("parallel",),
            vmem_limit_bytes=32 * 1024 * 1024),
    )(x16, w_qkv, b_qkv)

    # Free reshapes: per-sequence layout for the attention kernel.
    q = q.reshape(b, t, d)
    k = k.reshape(b, t, d)
    v = v.reshape(b, t, d)

    # ---- kernel 2: flash attention (per sequence) + fused output projection --
    if block_t is None:
        block_t = _pick_block(t, _mxu_score_block())
    n_blk = t // block_t

    q_map = lambda bi, qi, ki: (bi, qi, 0)
    # Clamp pruned (above-diagonal) kv blocks to the last useful index so the
    # block index doesn't change -> Pallas skips their DMA entirely.
    kv_map = lambda bi, qi, ki: (bi, jnp.minimum(ki, qi), 0)
    w_map = lambda bi, qi, ki: (0, 0)

    out = pl.pallas_call(
        functools.partial(flash_attn_kernel, n_head=n_head,
                          block_q=block_t, block_kv=block_t),
        grid=(b, n_blk, n_blk),
        in_specs=[
            pl.BlockSpec((1, block_t, d), q_map),             # q block
            pl.BlockSpec((1, block_t, d), kv_map),            # k block
            pl.BlockSpec((1, block_t, d), kv_map),            # v block
            pl.BlockSpec((d, d), w_map),                      # W_o (resident)
            pl.BlockSpec((1, d), w_map),                      # b_o
        ],
        out_specs=pl.BlockSpec((1, block_t, d), q_map),
        out_shape=jax.ShapeDtypeStruct((b, t, d), jnp.float32),
        scratch_shapes=[
            pltpu.VMEM((n_head, block_t, 1), jnp.float32),    # running max m
            pltpu.VMEM((n_head, block_t, 1), jnp.float32),    # running sum l
            pltpu.VMEM((n_head, block_t, hd), jnp.float32),   # unnormalized p@v
        ],
        compiler_params=pltpu.CompilerParams(
            dimension_semantics=("parallel", "parallel", "arbitrary"),
            vmem_limit_bytes=32 * 1024 * 1024),
    )(q, k, v, w_o, b_o)
    return out


# ----------------------------- pure-JAX reference ---------------------------
def reference_attention(x, p, n_head):
    bb, t, d = x.shape
    hd = d // n_head
    qkv = x @ p["w_qkv"] + p["b_qkv"][0]
    q, k, v = jnp.split(qkv, 3, axis=-1)
    q = q.reshape(bb, t, n_head, hd).transpose(0, 2, 1, 3)
    k = k.reshape(bb, t, n_head, hd).transpose(0, 2, 1, 3)
    v = v.reshape(bb, t, n_head, hd).transpose(0, 2, 1, 3)
    s = jnp.einsum("bhtd,bhsd->bhts", q, k) * (1.0 / math.sqrt(hd))
    mask = jnp.tril(jnp.ones((t, t), dtype=bool))
    s = jnp.where(mask, s, -jnp.inf)
    a = jax.nn.softmax(s, axis=-1)
    o = jnp.einsum("bhts,bhsd->bhtd", a, v).transpose(0, 2, 1, 3).reshape(bb, t, d)
    return o @ p["w_o"] + p["b_o"][0]


# --------------------------------- main -------------------------------------
if __name__ == "__main__":
    B, T, D, N_HEAD = 2, 16, 32, 4

    key = jax.random.PRNGKey(0)
    keys = jax.random.split(key, 5)
    # Deterministic synthetic parameters (shapes from the module __init__,
    # weights stored as (in, out)).
    params = {
        "w_qkv": 0.02 * jax.random.normal(keys[0], (D, 3 * D), jnp.float32),
        "b_qkv": 0.02 * jax.random.normal(keys[1], (1, 3 * D), jnp.float32),
        "w_o":   0.02 * jax.random.normal(keys[2], (D, D), jnp.float32),
        "b_o":   0.02 * jax.random.normal(keys[3], (1, D), jnp.float32),
    }
    x = jax.random.normal(keys[4], (B, T, D), jnp.float32)

    # block_t=8 / block_m=16 force multi-step grids at these tiny shapes so the
    # causal block pruning, the unmasked below-diagonal path and the online
    # softmax carry across kv blocks are all exercised.
    out = jax.block_until_ready(
        causal_self_attention(x, params, N_HEAD, block_t=8, block_m=16))
    ref = reference_attention(x, params, N_HEAD)

    assert out.shape == (B, T, D)
    err = float(jnp.max(jnp.abs(out - ref)))
    # Kernel uses bf16 matmul inputs (f32 accumulation) and an approximate EUP
    # reciprocal for the softmax denominator vs. the f32 reference, so allow
    # bf16-level tolerance.
    assert jnp.allclose(out, ref, atol=2e-3, rtol=2e-2), f"max abs err {err}"
    print("KERNEL_OK")
</pallas_src>

<mosaic_0001>
module attributes {stable_mosaic.version = 11 : i64} {
  func.func @qkv_proj_kernel(%arg0: i32, %arg1: memref<16x32xbf16, #tpu.memory_space<vmem>>, %arg2: memref<32x96xbf16, #tpu.memory_space<vmem>>, %arg3: memref<1x96xf32, #tpu.memory_space<vmem>>, %arg4: memref<16x32xbf16, #tpu.memory_space<vmem>>, %arg5: memref<16x32xbf16, #tpu.memory_space<vmem>>, %arg6: memref<16x32xbf16, #tpu.memory_space<vmem>>) attributes {dimension_semantics = [#tpu.dimension_semantics<parallel>], iteration_bounds = array<i64: 2>, scalar_prefetch = 0 : i64, scratch_operands = 0 : i64, tpu.core_type = #tpu.core_type<tc>, window_params = [{transform_indices = @transform_0, window_bounds = array<i64: 16, 32>}, {pipeline_mode = #tpu.pipeline_mode<synchronous>, transform_indices = @transform_1, window_bounds = array<i64: 32, 96>}, {pipeline_mode = #tpu.pipeline_mode<synchronous>, transform_indices = @transform_2, window_bounds = array<i64: 1, 96>}, {transform_indices = @transform_3, window_bounds = array<i64: 16, 32>}, {transform_indices = @transform_4, window_bounds = array<i64: 16, 32>}, {transform_indices = @transform_5, window_bounds = array<i64: 16, 32>}]} {
    %c0 = arith.constant 0 : index
    %c0_0 = arith.constant 0 : index
    %0 = vector.load %arg1[%c0, %c0_0] : memref<16x32xbf16, #tpu.memory_space<vmem>>, vector<16x32xbf16>
    %c0_1 = arith.constant 0 : index
    %c0_2 = arith.constant 0 : index
    %1 = vector.load %arg2[%c0_1, %c0_2] : memref<32x96xbf16, #tpu.memory_space<vmem>>, vector<32x96xbf16>
    %cst = arith.constant dense<0.000000e+00> : vector<16x96xf32>
    %2 = tpu.matmul %0, %1, %cst {dimension_numbers = #tpu.dot_dimension_numbers<[1], [0], [0], [1], [0, 0, 1, 1], [], []>} : vector<16x32xbf16>, vector<32x96xbf16>, vector<16x96xf32> -> vector<16x96xf32>
    %c0_3 = arith.constant 0 : index
    %c0_4 = arith.constant 0 : index
    %3 = vector.load %arg3[%c0_3, %c0_4] : memref<1x96xf32, #tpu.memory_space<vmem>>, vector<1x96xf32>
    %4 = vector.broadcast %3 : vector<1x96xf32> to vector<16x96xf32>
    %5 = arith.addf %2, %4 : vector<16x96xf32>
    %6 = vector.extract_strided_slice %5 {offsets = [0, 0], sizes = [16, 32], strides = [1, 1]} : vector<16x96xf32> to vector<16x32xf32>
    %cst_5 = arith.constant 0.353553385 : f32
    %7 = vector.broadcast %cst_5 : f32 to vector<16x32xf32>
    %8 = arith.mulf %6, %7 : vector<16x32xf32>
    %9 = arith.truncf %8 : vector<16x32xf32> to vector<16x32xbf16>
    %c0_6 = arith.constant 0 : index
    %c0_7 = arith.constant 0 : index
    %10 = vector.load %arg4[%c0_6, %c0_7] : memref<16x32xbf16, #tpu.memory_space<vmem>>, vector<16x32xbf16>
    tpu.vector_store %arg4[%c0_6, %c0_7], %9 {strides = array<i32>} : memref<16x32xbf16, #tpu.memory_space<vmem>>, vector<16x32xbf16>,
    %11 = vector.extract_strided_slice %5 {offsets = [0, 32], sizes = [16, 32], strides = [1, 1]} : vector<16x96xf32> to vector<16x32xf32>
    %12 = arith.truncf %11 : vector<16x32xf32> to vector<16x32xbf16>
    %c0_8 = arith.constant 0 : index
    %c0_9 = arith.constant 0 : index
    %13 = vector.load %arg5[%c0_8, %c0_9] : memref<16x32xbf16, #tpu.memory_space<vmem>>, vector<16x32xbf16>
    tpu.vector_store %arg5[%c0_8, %c0_9], %12 {strides = array<i32>} : memref<16x32xbf16, #tpu.memory_space<vmem>>, vector<16x32xbf16>,
    %14 = vector.extract_strided_slice %5 {offsets = [0, 64], sizes = [16, 32], strides = [1, 1]} : vector<16x96xf32> to vector<16x32xf32>
    %15 = arith.truncf %14 : vector<16x32xf32> to vector<16x32xbf16>
    %c0_10 = arith.constant 0 : index
    %c0_11 = arith.constant 0 : index
    %16 = vector.load %arg6[%c0_10, %c0_11] : memref<16x32xbf16, #tpu.memory_space<vmem>>, vector<16x32xbf16>
    tpu.vector_store %arg6[%c0_10, %c0_11], %15 {strides = array<i32>} : memref<16x32xbf16, #tpu.memory_space<vmem>>, vector<16x32xbf16>,
    return
  }
  func.func @transform_0(%arg0: i32) -> (i32, i32) {
    %c0_i32 = arith.constant 0 : i32
    %c0_i32_0 = arith.constant 0 : i32
    return %arg0, %c0_i32 : i32, i32
  }
  func.func @transform_1(%arg0: i32) -> (i32, i32) {
    %c0_i32 = arith.constant 0 : i32
    %c0_i32_0 = arith.constant 0 : i32
    %c0_i32_1 = arith.constant 0 : i32
    return %c0_i32, %c0_i32_0 : i32, i32
  }
  func.func @transform_2(%arg0: i32) -> (i32, i32) {
    %c0_i32 = arith.constant 0 : i32
    %c0_i32_0 = arith.constant 0 : i32
    %c0_i32_1 = arith.constant 0 : i32
    return %c0_i32, %c0_i32_0 : i32, i32
  }
  func.func @transform_3(%arg0: i32) -> (i32, i32) {
    %c0_i32 = arith.constant 0 : i32
    %c0_i32_0 = arith.constant 0 : i32
    return %arg0, %c0_i32 : i32, i32
  }
  func.func @transform_4(%arg0: i32) -> (i32, i32) {
    %c0_i32 = arith.constant 0 : i32
    %c0_i32_0 = arith.constant 0 : i32
    return %arg0, %c0_i32 : i32, i32
  }
  func.func @transform_5(%arg0: i32) -> (i32, i32) {
    %c0_i32 = arith.constant 0 : i32
    %c0_i32_0 = arith.constant 0 : i32
    return %arg0, %c0_i32 : i32, i32
  }
}

</mosaic_0001>

<bundles_post_ra>
// kernel: tpu_custom_call.1
= control target key start
LH: loop header
LB: loop body
LE: loop exit
PB: predicated region body
PF: predicated region fallthrough
CT: control target
= control target key end

     0   :  { %11 = vsyncpa [#allocation3], 0  ;;  %s1255_s0 = inlined_call_operand.hbm [shape: bf16[32,32], index: 0, kind: input, shape index: {}]   ;;  %s1256_s1 = inlined_call_operand.hbm [shape: bf16[32,96], index: 1, kind: input, shape index: {}]   ;;  %s1257_s2 = inlined_call_operand.vmem [shape: f32[1,96], index: 2, kind: input, shape index: {}]   ;;  %s1258_s3 = inlined_call_operand.hbm [shape: bf16[32,32], index: 3, kind: output, shape index: {0}]   ;;  %s1259_s4 = inlined_call_operand.hbm [shape: bf16[32,32], index: 4, kind: output, shape index: {1}]   ;;  %s1260_s5 = inlined_call_operand.hbm [shape: bf16[32,32], index: 5, kind: output, shape index: {2}]  }
   0x1   :  { %13 = vsyncpa [#allocation3 + $0x1], 0 }
   0x2   :  { %14 = vsyncpa [#allocation6], 0 }
   0x3   :  { %15 = vsyncpa [#allocation4], 0 }
   0x4   :  { %17 = vsyncpa [#allocation4 + $0x1], 0 }
   0x5   :  { %18 = vsyncpa [#allocation9], 0 }
   0x6   :  { %20 = vsyncpa [#allocation9 + $0x1], 0  ;;  %s952_s18 = smov 0   ;;  %s954_s19 = smov 0  }
   0x7   :  { %s956_s20 = smov 0   ;;  %s958_s21 = smov 0  }
   0x8 LB: > { %s973_s22 = sadd.s32 4294967295, %s908_s21   ;;  %s1264_s23 = sadd.s32 4294967294, %s908_s21   ;;  %s908_s21 = sphi %s958_s21, %s1282_s21   ;;  %s904_s20 = sphi %s956_s20, %s1281_s20   ;;  %s900_s19 = sphi %s954_s19, %s1280_s19   ;;  %s896_s18 = sphi %s952_s18, %s1279_s18  }
   0x9   : > { %p46_p0 = scmp.ne.s32.totalorder %s900_s19, %s896_s18  ;;  %p1261_p1 = scmp.eq.s32.totalorder %s973_s22, 0 }
   0xa   : > { %p118_p3 = scmp.eq.s32.totalorder %s1264_s23, 1  ;;  %p592_p5 = scmp.ge.s32.totalorder %s908_s21, 1 }
   0xb   : > { %p984_p4 = por %p1261_p1, %p46_p0  ;;  %p177_p7 = scmp.lt.s32.totalorder %s908_s21, 3 }
   0xc   : > { %p989_p6 = por %p118_p3, %p46_p0  ;;  %s910_s27 = smov [#allocation5]  }
   0xd   : > { %s1265_s24 = scalar_select %p984_p4, 1, 0 }
   0xe   : > { %s1266_s25 = scalar_select %p989_p6, 1, 0 }
   0xf   : > { %p994_p8 = pnand %p592_p5, %p177_p7  ;;  %s189_s28 = sshll.u32 %s910_s27, 4  ;;  %s998_s28 = int_to_ptr.vmem [resolvable:$true] %s189_s28 }
  0x10   : > { %s1010_s30 = sadd.s32 1, %s908_s21   ;;  %s33_s6 = sadd.s32 1, %s904_s20 }
  0x11   : > { %s1267_s26 = scalar_select %p994_p8, 1, 0 }
  0x12   : > { %p655_p9 = pneg %p994_p8  ;;  %s30_s7 = ssub.s32 %s908_s21, %s1010_s30 }
  0x13   : > { %s720_s10 = scalar_lea.hbm %s1256_s1, 256 }
  0x14   : > { %p1005_p11 = pnand %p655_p9, %p1261_p1  ;;  %p721_p12 = scmp.ne.s32.totalorder %s1256_s1, %s720_s10 }
  0x15   : > { %p727_p5 = scmp.lt.u32.totalorder %s720_s10, %s1256_s1 }
  0x16   : > { %p722_p13 = pneg %p1005_p11 }
  0x18   : > { %p723_p0 = pnand %p722_p13, %p721_p12 }
  0x1a   : > { %p724_p3 = pneg %p723_p0 }
  0x1c   : > { %p729_p7 = pnand %p727_p5, %p724_p3 }
  0x1e   : > { %732 = shalt.err (!%p729_p7)
}
  0x1f   : > { %s733_s15 = scalar_lea.vmem %s998_s28, 256  ;;  %p741_p2 = scmp.lt.s32.totalorder %s998_s28, %s998_s28 }
  0x20   : > { %p734_p9 = scmp.ne.s32.totalorder %s998_s28, %s733_s15  ;;  %p742_p6 = scmp.lt.s32.totalorder %s733_s15, %s733_s15 }
  0x22   : > { %p736_p10 = pnand %p734_p9, %p722_p13  ;;  %p743_p4 = por %p742_p6, %p741_p2 }
  0x24   : > { %p737_p1 = pneg %p736_p10 }
  0x26   : > { %p744_p8 = pnand %p743_p4, %p737_p1 }
  0x28   : > { %747 = shalt.err (!%p744_p8)
}
  0x29   : > { %s911_s16 = smov 64   ;;  %s912_s17 = smov 4  }
  0x2a   : > { %658 = dma.hbm_to_vmem [thread:$0]  (!%p1005_p11), %s1256_s1, 256, %s998_s28, [#allocation6], %s911_s16, %s911_s16, %s912_s17  }
  0x2b   : > { %p31_p1 = scmp.eq.s32.totalorder %s30_s7, 0  ;;  %p40_p2 = scmp.ne.s32.totalorder %s904_s20, %s900_s19 }
  0x2c   : > { %p41_p4 = scmp.eq.s32.totalorder %s908_s21, 0  ;;  %p674_p6 = scmp.lt.s32.totalorder %s908_s21, 2 }
  0x2d   : > { %s1044_s9 = scalar_select %p31_p1, %s904_s20, %s33_s6  }
  0x2e   : > { %p42_p8 = por %p41_p4, %p40_p2  ;;  %p1269_p10 = scmp.eq.s32.totalorder %s973_s22, 1 }
  0x2f   : > { %s206_s29 = sand.u32 1, %s904_s20   ;;  %s624_s11 = sshll.u32 %s908_s21, 7 }
  0x30   : > { %p1048_p12 = por %p1269_p10, %p40_p2  ;;  %s595_s12 = sshll.u32 %s206_s29, 3 }
  0x31   : > { %s1057_s15 = scalar_lea.hbm %s1255_s0, %s624_s11  ;;  %s210_s28 = scalar_lea.vmem [#allocation2], %s595_s12 }
  0x32   : > { %s217_s6 = sshll.u32 %s210_s28, 4  ;;  %p1059_p11 = pnand %p674_p6, %p42_p8  ;;  %s1063_s6 = int_to_ptr.vmem [resolvable:$true] %s217_s6 }
  0x33   : > { %s1065_s27 = scalar_lea.sflag [#allocation3], %s206_s29  ;;  %s748_s8 = scalar_lea.hbm %s1057_s15, 128 }
  0x34   : > { %p749_p13 = scmp.ne.s32.totalorder %s1057_s15, %s748_s8  ;;  %p750_p0 = pneg %p1059_p11 }
  0x35   : > { %s753_s13 = scalar_lea.hbm %s1255_s0, 256  ;;  %p754_p7 = scmp.lt.u32.totalorder %s1057_s15, %s1255_s0 }
  0x36   : > { %p751_p3 = pnand %p750_p0, %p749_p13  ;;  %p755_p9 = scmp.lt.u32.totalorder %s753_s13, %s748_s8 }
  0x37   : > { %p757_p2 = scmp.lt.u32.totalorder %s748_s8, %s1057_s15 }
  0x38   : > { %p752_p5 = pneg %p751_p3  ;;  %p756_p1 = por %p755_p9, %p754_p7 }
  0x3a   : > { %p758_p4 = por %p757_p2, %p756_p1 }
  0x3c   : > { %p759_p6 = pnand %p758_p4, %p752_p5 }
  0x3e   : > { %762 = shalt.err (!%p759_p6)
}
  0x3f   : > { %s763_s29 = scalar_lea.vmem %s1063_s6, 128  ;;  %s913_s11 = smov [#allocation2]  }
  0x40   : > { %p764_p8 = scmp.ne.s32.totalorder %s1063_s6, %s763_s29  ;;  %s768_s12 = sshll.u32 %s913_s11, 4  ;;  %s769_s12 = int_to_ptr.vmem [resolvable:$false] %s768_s12 }
  0x41   : > { %s770_s14 = scalar_lea.vmem %s769_s12, 256  ;;  %p771_p3 = scmp.lt.s32.totalorder %s1063_s6, %s769_s12 }
  0x42   : > { %p766_p10 = pnand %p764_p8, %p750_p0  ;;  %p772_p7 = scmp.lt.s32.totalorder %s770_s14, %s763_s29 }
  0x44   : > { %p767_p13 = pneg %p766_p10  ;;  %p773_p9 = por %p772_p7, %p771_p3 }
  0x46   : > { %p774_p1 = pnand %p773_p9, %p767_p13 }
  0x48   : > { %777 = shalt.err (!%p774_p1)
}
  0x49   : > { %662 = dma.hbm_to_vmem [thread:$0]  (!%p1059_p11), %s1057_s15, 128, %s1063_s6, %s1065_s27, %s911_s16, %s911_s16, %s912_s17  }
  0x4a   : > { %p1272_p0 = scmp.ne.s32.totalorder %s1267_s26, 0 }
  0x4b   : > { %s1099_s8 = sand.u32 (!%p1272_p0), 1, %s900_s19   ;;  %p1273_p5 = scmp.ne.s32.totalorder (!%p1272_p0), %s1265_s24, 0 }
  0x4c   : > { %229 = sbr.rel (%p1272_p0) target bundleno = 467 (0x1d3), region = 32  ;;  %s1102_s13 = sshll.u32 (!%p1272_p0), %s1099_s8, 3 }
  0x4d   : > { %s232_s7 = scalar_lea.sflag (!%p1272_p0), [#allocation3], %s1099_s8  ;;  %s235_s28 = scalar_lea.vmem (!%p1272_p0), [#allocation2], %s1102_s13 }
  0x53   : > { %879 = dma.done.wait (%p1273_p5), %s232_s7, 128  }
  0x54   : > { %881 = vsyncadd (%p1273_p5), %s232_s7, 4294967168  ;;  %p1274_p11 = scmp.eq.s32.totalorder %s973_s22, 0 }
  0x56   : > { %883 = dma.done.wait (%p1274_p11), [#allocation6], 256   ;;  %p1275_p2 = pmov %p1274_p11 }
  0x57   : > { %v914_v0 = vmov 0.0   ;;  %vm915_vm0 = vmmov 0   ;;  %v717_v1 = vld [vmem:[#allocation5] sm:$0xff]   ;;  %v718_v2 = vld [vmem:[#allocation5 + $0x8] sm:$0xff]   ;;  %v719_v3 = vld [vmem:[%s235_s28] sm:$0xff]   ;;  %vm311_vm1 = vcmask 261120  }
  0x58   : > { %885 = vsyncadd (%p1275_p2), [#allocation6], 4294967040  ;;  %635 = vmatprep.subr.bf16.mxu0 %v914_v0  ;;  %639 = vmatprep.mubr.msk.bf16.mxu0 %vm915_vm0, %v914_v0  ;;  %v604_v4 = vld [vmem:[%s1257_s2] ss:$0 sm:$0xff]  ;;  %vm366_vm2 = vcmask 257024   ;;  %s1118_s16 = sshll.u32 %s973_s22, 7 }
  0x59   : > { %636 = vmatpush3.bf16.msra.mxu0 %v717_v1  ;;  %s261_s17 = scalar_lea.vmem [#allocation7], %s1102_s13  ;;  %s916_s6 = smov 64  }
  0x5a   : > { %637 = vmatprep.subr.bf16.mxu0 %v914_v0  ;;  %s415_s15 = sshll.u32 %s261_s17, 4  ;;  %s917_s27 = smov 96   ;;  %s1129_s15 = int_to_ptr.vmem [resolvable:$true] %s415_s15 }
  0x5b   : > { %s1127_s12 = scalar_lea.hbm %s1258_s3, %s1118_s16  ;;  %s392_s14 = scalar_lea.sflag [#allocation4], %s1099_s8 }
  0x5c   : > { %s778_s7 = scalar_lea.vmem %s1129_s15, 128  ;;  %s918_s28 = smov [#allocation7]  }
  0x5d   : > { %638 = vmatpush3.bf16.msra.mxu0 %v718_v2  ;;  %p779_p4 = scmp.ne.s32.totalorder %s1129_s15, %s778_s7  ;;  %s782_s24 = sshll.u32 %s918_s28, 4  ;;  %s783_s24 = int_to_ptr.vmem [resolvable:$false] %s782_s24 }
  0x5e   : > { %s784_s26 = scalar_lea.vmem %s783_s24, 256  ;;  %p785_p10 = scmp.lt.s32.totalorder %s1129_s15, %s783_s24 }
  0x5f   : > { %p780_p6 = pnand %p779_p4, %p1048_p12  ;;  %p786_p13 = scmp.lt.s32.totalorder %s784_s26, %s778_s7 }
  0x60   : > { %640 = vmatmul.mubr.msk.bf16.vlgmr.msra.gmra.mrb[0].mxu0 %vm311_vm1, %v719_v3 }
  0x61   : > { %p781_p8 = pneg %p780_p6  ;;  %p787_p3 = por %p786_p13, %p785_p10 }
  0x63   : > { %p788_p7 = pnand %p787_p3, %p781_p8 }
 0x133   : > { %v349_v5 = vpop.f32.mrb[0].mxu0 }
 0x134   : > { %v350_v6 = vadd.f32 %v604_v4, %v349_v5  ;;  %v641_v7 = vpop.f32.mrb[1].mxu0 }
 0x135   : > { %v352_v8 = vpop.f32.mrb[2].mxu0 }
 0x136   : > { %v356_v9 = vmul.f32 0.35355338, %v350_v6  ;;  %v353_v10 = vadd.f32 %v604_v4, %v352_v8  ;;  %v642_v11 = vpop.f32.mrb[3].mxu0  ;;  %v627_v12 = vpack.c.bf16 %v350_v6, %v350_v6 }
 0x138   : > { %v625_v13 = vpack.c.bf16 %v356_v9, %v356_v9  ;;  %v357_v14 = vmul.f32 0.35355338, %v353_v10  ;;  %383 = vrot.lane.b32.xlu1 %v627_v12, %s916_s6  ;;  %375 = vrot.lane.b32.xlu0 %v627_v12, %s917_s27  ;;  %v628_v16 = vpack.c.bf16 %v353_v10, %v353_v10 }
 0x13a   : > { %367 = vst.msk [vmem:[%s261_s17] sm:$0xf] %vm366_vm2, %v625_v13  ;;  %v626_v15 = vpack.c.bf16 %v357_v14, %v357_v14 }
 0x13c   : > { %368 = vst.msk [vmem:[%s261_s17 + $0x4] sm:$0xf] %vm366_vm2, %v626_v15  ;;  %385 = vrot.lane.b32.xlu1 %v628_v16, %s916_s6  ;;  %377 = vrot.lane.b32.xlu0 %v628_v16, %s917_s27 }
 0x13d   : > { %791 = shalt.err (!%p788_p7)
}
 0x13e   : > { %s792_s17 = scalar_lea.hbm %s1127_s12, 128  ;;  %s796_s11 = scalar_lea.hbm %s1258_s3, 256 }
 0x13f   : > { %p793_p9 = scmp.ne.s32.totalorder %s1127_s12, %s792_s17  ;;  %p797_p5 = scmp.lt.u32.totalorder %s1127_s12, %s1258_s3 }
 0x140   : > { %p798_p11 = scmp.lt.u32.totalorder %s796_s11, %s792_s17  ;;  %p800_p4 = scmp.lt.u32.totalorder %s792_s17, %s1127_s12 }
 0x141   : > { %p794_p1 = pnand %p793_p9, %p1048_p12 }
 0x142   : > { %p799_p2 = por %p798_p11, %p797_p5 }
 0x143   : > { %p795_p0 = pneg %p794_p1 }
 0x144   : > { %p801_p6 = por %p800_p4, %p799_p2 }
 0x146   : > { %p802_p8 = pnand %p801_p6, %p795_p0 }
 0x148   : > { %805 = shalt.err (!%p802_p8)
}
 0x149   : > { %s919_s7 = smov 4   ;;  %s268_s26 = scalar_lea.vmem [#allocation8], %s1102_s13 }
 0x14a   : > { %649 = dma.vmem_to_hbm [thread:$0]  (%p1048_p12), %s1129_s15, 128, %s1127_s12, %s392_s14, %s916_s6, %s916_s6, %s919_s7  }
 0x14b   : > { %s431_s17 = sshll.u32 %s268_s26, 4  ;;  %s396_s27 = sand.u32 1, %s973_s22   ;;  %s1165_s17 = int_to_ptr.vmem [resolvable:$true] %s431_s17 }
 0x14c   : > { %s275_s29 = scalar_lea.vmem [#allocation10], %s1102_s13  ;;  %s1171_s15 = scalar_lea.hbm %s1259_s4, %s1118_s16 }
 0x14d   : > { %s447_s11 = sshll.u32 %s275_s29, 4  ;;  %s1179_s12 = scalar_lea.hbm %s1260_s5, %s1118_s16  ;;  %s1173_s11 = int_to_ptr.vmem [resolvable:$true] %s447_s11 }
 0x14e   : > { %s1183_s14 = scalar_lea.sflag [#allocation9], %s396_s27  ;;  %s806_s24 = scalar_lea.vmem %s1165_s17, 128 }
 0x14f   : > { %p807_p10 = scmp.ne.s32.totalorder %s1165_s17, %s806_s24  ;;  %s920_s8 = smov [#allocation8]  }
 0x150   : > { %s810_s28 = sshll.u32 %s920_s8, 4  ;;  %s811_s28 = int_to_ptr.vmem [resolvable:$false] %s810_s28 }
 0x151   : > { %p808_p13 = pnand %p807_p10, %p1048_p12  ;;  %s812_s23 = scalar_lea.vmem %s811_s28, 256 }
 0x152   : > { %p813_p7 = scmp.lt.s32.totalorder %s1165_s17, %s811_s28  ;;  %p814_p9 = scmp.lt.s32.totalorder %s812_s23, %s806_s24 }
 0x153   : > { %p809_p3 = pneg %p808_p13 }
 0x154   : > { %p815_p1 = por %p814_p9, %p813_p7 }
 0x156   : > { %p816_p0 = pnand %p815_p1, %p809_p3 }
 0x1aa   : > { %v384_v17 = vpop.permute.xlu1 %383  ;;  %v376_v18 = vpop.permute.xlu0 %375 }
 0x1ab   : > { %389 = vst.msk [vmem:[%s275_s29] sm:$0xf] %vm366_vm2, %v384_v17  ;;  %381 = vst.msk [vmem:[%s268_s26] sm:$0xf] %vm366_vm2, %v376_v18 }
 0x1ae   : > { %v386_v19 = vpop.permute.xlu1 %385  ;;  %v378_v20 = vpop.permute.xlu0 %377 }
 0x1af   : > { %390 = vst.msk [vmem:[%s275_s29 + $0x4] sm:$0xf] %vm366_vm2, %v386_v19  ;;  %382 = vst.msk [vmem:[%s268_s26 + $0x4] sm:$0xf] %vm366_vm2, %v378_v20 }
 0x1b0   : > { %819 = shalt.err (!%p816_p0)
}
 0x1b1   : > { %s820_s16 = scalar_lea.hbm %s1171_s15, 128  ;;  %s824_s29 = scalar_lea.hbm %s1259_s4, 256 }
 0x1b2   : > { %p821_p5 = scmp.ne.s32.totalorder %s1171_s15, %s820_s16  ;;  %p825_p4 = scmp.lt.u32.totalorder %s1171_s15, %s1259_s4 }
 0x1b3   : > { %p826_p6 = scmp.lt.u32.totalorder %s824_s29, %s820_s16  ;;  %p828_p10 = scmp.lt.u32.totalorder %s820_s16, %s1171_s15 }
 0x1b4   : > { %p822_p11 = pnand %p821_p5, %p1048_p12 }
 0x1b5   : > { %p827_p8 = por %p826_p6, %p825_p4 }
 0x1b6   : > { %p823_p2 = pneg %p822_p11 }
 0x1b7   : > { %p829_p13 = por %p828_p10, %p827_p8 }
 0x1b9   : > { %p830_p3 = pnand %p829_p13, %p823_p2 }
 0x1bb   : > { %833 = shalt.err (!%p830_p3)
}
 0x1bc   : > { %650 = dma.vmem_to_hbm [thread:$0]  (%p1048_p12), %s1165_s17, 128, %s1171_s15, %s1183_s14, %s916_s6, %s916_s6, %s919_s7  }
 0x1bd   : > { %s834_s23 = scalar_lea.vmem %s1173_s11, 128  ;;  %s921_s24 = smov [#allocation10]  }
 0x1be   : > { %p835_p7 = scmp.ne.s32.totalorder %s1173_s11, %s834_s23  ;;  %s838_s8 = sshll.u32 %s921_s24, 4  ;;  %s839_s8 = int_to_ptr.vmem [resolvable:$false] %s838_s8 }
 0x1bf   : > { %s840_s28 = scalar_lea.vmem %s839_s8, 256  ;;  %p841_p0 = scmp.lt.s32.totalorder %s1173_s11, %s839_s8 }
 0x1c0   : > { %p836_p9 = pnand %p835_p7, %p1048_p12  ;;  %p842_p5 = scmp.lt.s32.totalorder %s840_s28, %s834_s23 }
 0x1c2   : > { %p837_p1 = pneg %p836_p9  ;;  %p843_p11 = por %p842_p5, %p841_p0 }
 0x1c4   : > { %p844_p2 = pnand %p843_p11, %p837_p1 }
 0x1c6   : > { %847 = shalt.err (!%p844_p2)
}
 0x1c7   : > { %s848_s17 = scalar_lea.hbm %s1179_s12, 128  ;;  %s852_s26 = scalar_lea.hbm %s1260_s5, 256 }
 0x1c8   : > { %p849_p4 = scmp.ne.s32.totalorder %s1179_s12, %s848_s17  ;;  %p853_p10 = scmp.lt.u32.totalorder %s1179_s12, %s1260_s5 }
 0x1c9   : > { %p854_p13 = scmp.lt.u32.totalorder %s852_s26, %s848_s17  ;;  %p856_p7 = scmp.lt.u32.totalorder %s848_s17, %s1179_s12 }
 0x1ca   : > { %p850_p6 = pnand %p849_p4, %p1048_p12 }
 0x1cb   : > { %p855_p3 = por %p854_p13, %p853_p10 }
 0x1cc   : > { %p851_p8 = pneg %p850_p6 }
 0x1cd   : > { %p857_p9 = por %p856_p7, %p855_p3 }
 0x1cf   : > { %p858_p1 = pnand %p857_p9, %p851_p8 }
 0x1d1   : > { %861 = shalt.err (!%p858_p1)
}
 0x1d2   : > { %651 = dma.vmem_to_hbm [thread:$0]  (%p1048_p12), %s1173_s11, 128, %s1179_s12, %s1183_s14, %s916_s6, %s916_s6, %s919_s7  }
 0x1d3 PF: > { %s462_s22 = sand.u32 1, %s896_s18   ;;  %p1276_p0 = scmp.ne.s32.totalorder %s1266_s25, 0 }
 0x1d4   : > { %p1277_p5 = scmp.ge.s32.totalorder %s908_s21, 2  ;;  %s463_s13 = scalar_lea.sflag [#allocation4], %s462_s22 }
 0x1d6   : > { %p664_p11 = pnand %p1277_p5, %p1276_p0 }
 0x1d8   : > { %887 = dma.done.wait (!%p664_p11), %s463_s13, 128  }
 0x1d9   : > { %889 = vsyncadd (!%p664_p11), %s463_s13, 4294967168  ;;  %s1278_s10 = sadd.s32 4294967294, %s908_s21  }
 0x1da   : > { %s471_s23 = sand.u32 1, %s1278_s10  }
 0x1db   : > { %s472_s24 = scalar_lea.sflag [#allocation9], %s471_s23 }
 0x1dc   : > { %891 = dma.done.wait (!%p664_p11), %s472_s24, 256  }
 0x1dd   : > { %893 = vsyncadd (!%p664_p11), %s472_s24, 4294967040  ;;  %p23_p12 = scmp.ge.s32.totalorder %s1010_s30, 4   ;;  %s1279_s18 = smov %s900_s19 }
 0x1de   : > { %s1280_s19 = smov %s904_s20  ;;  %s1281_s20 = smov %s1044_s9 }
 0x1df   : > { %s1282_s21 = smov %s1010_s30  ;;  %25 = sbr.rel (!%p23_p12) target bundleno = 8 (0x8), region = 113 }
 0x1e6   :  { %486 = vsyncpa [#allocation3], 1 }
 0x1e7   :  { %488 = vsyncpa [#allocation3 + $0x1], 1 }
 0x1e8   :  { %489 = vsyncpa [#allocation6], 1 }
 0x1e9   :  { %490 = vsyncpa [#allocation4], 1 }
 0x1ea   :  { %492 = vsyncpa [#allocation4 + $0x1], 1 }
 0x1eb   :  { %493 = vsyncpa [#allocation9], 1 }
 0x1ec   :  { %495 = vsyncpa [#allocation9 + $0x1], 1 }

</bundles_post_ra>
